<compile_context>
chip_gen: v7x
topology: tpu7x:2x2x1
jax: 0.10.0
libtpu: 0.0.40
codegen_flags: <defaults>
</compile_context>

<pallas_src>
import functools

import jax
import jax.numpy as jnp
from jax.experimental import pallas as pl
from jax.experimental.pallas import tpu as pltpu

_LANES = 128
_SUBLANES = 8


def _round_up(x, m):
    return ((x + m - 1) // m) * m


@functools.lru_cache(maxsize=None)
def _hw_vmem_bytes():
    try:
        info = pltpu.get_tpu_info()
        for name in ("vmem_capacity_bytes", "vmem_bytes", "vmem_size_bytes"):
            v = getattr(info, name, None)
            if v:
                return int(v)
    except Exception:
        pass
    return 64 * 1024 * 1024          # conservative fallback (v7x per-TC VMEM)


def _vmem_limit_bytes():
    # 64 MiB scoped budget on v5e/v6e (128 MiB physical), 32 MiB on v7x (64 MiB).
    return min(_hw_vmem_bytes() // 2, 64 * 1024 * 1024)


def _tile_budget_bytes():
    # Per-grid-step input bytes; inputs are double-buffered, leave headroom.
    return min(_vmem_limit_bytes() // 4, 16 * 1024 * 1024)


def _compiler_params():
    return pltpu.CompilerParams(
        dimension_semantics=("parallel",),   # independent per-tile partials
        vmem_limit_bytes=_vmem_limit_bytes(),
    )


def _pack3(s0, s1, s2):
    """Pack three f32 scalars into a lane-dense (1, 8, 128) output block."""
    ridx = jax.lax.broadcasted_iota(jnp.int32, (_SUBLANES, _LANES), 0)
    blk = jnp.where(ridx == 0, s0,
          jnp.where(ridx == 1, s1,
          jnp.where(ridx == 2, s2, 0.0)))
    return blk[jnp.newaxis]


# ----------------------------------------------------------------------------
# Kernels
# ----------------------------------------------------------------------------

def _binary_margin_kernel(x_ref, out_ref, *, n_p, n_total, block_rows):
    """Binary (C==2) merged-stream tile over a lane-dense f32 margin slab.

    Flat layout: [0, n_p) positives, [n_p, n_total) unlabeled, rest padding.
    Emits (sum softplus(x) over pos, sum x over pos, sum softplus(x) over unl).
    """
    i = pl.program_id(0)
    x = x_ref[...]                                              # (bt, 128) f32
    sp = jnp.maximum(x, 0.0) + jnp.log(1.0 + jnp.exp(-jnp.abs(x)))

    row = jax.lax.broadcasted_iota(jnp.int32, x.shape, 0)
    lane = jax.lax.broadcasted_iota(jnp.int32, x.shape, 1)
    flat = (i * block_rows + row) * _LANES + lane
    is_pos = flat < n_p            # segment split doubles as validity mask
    is_valid = flat < n_total

    s_p = jnp.sum(jnp.where(is_pos, sp, 0.0))
    s_xp = jnp.sum(jnp.where(is_pos, x, 0.0))
    s_u = jnp.sum(jnp.where(is_valid, sp, 0.0)) - s_p
    out_ref[...] = _pack3(s_p, s_xp, s_u)


def _general_ce_kernel(z_ref, t_ref, out_ref, *, n_p, n_total, block_lanes):
    """General-C merged-stream tile, lane-dense: classes in sublanes."""
    i = pl.program_id(0)
    z = z_ref[...].astype(jnp.float32)                          # (C, TL)
    t = t_ref[...]                                              # (1, TL) int32

    m = jnp.max(z, axis=0, keepdims=True)                       # (1, TL)
    zs = z - m
    lse = jnp.log(jnp.sum(jnp.exp(zs), axis=0, keepdims=True))  # (1, TL)

    # One softmax pass reused for both label sets (fused CE pair).
    cls = jax.lax.broadcasted_iota(jnp.int32, z.shape, 0)
    picked_pos = jnp.sum(jnp.where(cls == t, zs, 0.0), axis=0, keepdims=True)
    picked_rev = jnp.sum(jnp.where(cls == (1 - t), zs, 0.0), axis=0, keepdims=True)
    nll_pos = lse - picked_pos
    nll_rev = lse - picked_rev

    lane = jax.lax.broadcasted_iota(jnp.int32, nll_pos.shape, 1)
    flat = i * block_lanes + lane
    is_pos = flat < n_p
    is_valid = flat < n_total

    s_p = jnp.sum(jnp.where(is_pos, nll_pos, 0.0))
    s_rev = jnp.sum(jnp.where(is_pos, nll_rev, 0.0))
    s_u = jnp.sum(jnp.where(is_valid, nll_pos, 0.0)) - s_p
    out_ref[...] = _pack3(s_p, s_rev, s_u)


# ----------------------------------------------------------------------------
# Launch helpers
# ----------------------------------------------------------------------------

def _launch(kernel, grid, in_specs, in_arrays):
    partials = pl.pallas_call(
        kernel,
        grid=(grid,),
        in_specs=in_specs,
        out_specs=pl.BlockSpec((1, _SUBLANES, _LANES), lambda i: (i, 0, 0)),
        out_shape=jax.ShapeDtypeStruct((grid, _SUBLANES, _LANES), jnp.float32),
        compiler_params=_compiler_params(),
    )(*in_arrays)
    return (partials[:, 0, 0].sum(),
            partials[:, 1, 0].sum(),
            partials[:, 2, 0].sum())


def _pick_block_rows(rows, requested):
    """Rows per binary tile: multiple of 8, VMEM-budgeted, grid >= 2 when possible."""
    row_bytes = _LANES * 4                       # f32 margin slab
    target = requested if requested is not None else max(
        _SUBLANES, _tile_budget_bytes() // row_bytes)
    half = -(-rows // 2)                         # ceil(rows/2) -> >=2 grid steps (v7x)
    target = min(target, max(_SUBLANES, half))
    target = max(_SUBLANES, (target // _SUBLANES) * _SUBLANES)
    return min(target, rows)


def _pick_block_lanes(lanes, col_bytes, requested):
    """Samples (lanes) per general-C tile: multiple of 128, VMEM-budgeted."""
    target = requested if requested is not None else max(
        _LANES, _tile_budget_bytes() // max(col_bytes, 1))
    half = -(-lanes // 2)
    target = min(target, max(_LANES, half))
    target = max(_LANES, (target // _LANES) * _LANES)
    return min(target, lanes)


def _binary_sums(outputs_p, outputs_u, targets_p, targets_u, block_rows):
    """C==2 fast path: one fused margin slab, one pallas_call for both streams."""
    n_p = outputs_p.shape[0]
    n_u = outputs_u.shape[0]
    n_total = n_p + n_u

    def margin(z, t):
        z32 = z.astype(jnp.float32)
        sgn = 1.0 - 2.0 * t.astype(jnp.float32)
        return sgn * (z32[:, 1] - z32[:, 0])     # CE = softplus(margin)

    x = jnp.concatenate([margin(outputs_p, targets_p),
                         margin(outputs_u, targets_u)])
    rows = _round_up(pl.cdiv(n_total, _LANES), _SUBLANES)
    slab = jnp.pad(x, (0, rows * _LANES - n_total)).reshape(rows, _LANES)

    bt = _pick_block_rows(rows, block_rows)
    grid = pl.cdiv(rows, bt)
    kernel = functools.partial(_binary_margin_kernel,
                               n_p=n_p, n_total=n_total, block_rows=bt)
    in_specs = [pl.BlockSpec((bt, _LANES), lambda i: (i, 0))]
    s_p, s_xp, s_u = _launch(kernel, grid, in_specs, (slab,))
    # softplus(-x) = softplus(x) - x  =>  reversed-label CE sum = s_p - s_xp.
    return s_p, s_p - s_xp, s_u


def _general_sums(outputs_p, outputs_u, targets_p, targets_u, block_hint):
    """General C path: lane-dense (C, N) layout, one pallas_call for both streams."""
    n_p, c = outputs_p.shape
    n_u = outputs_u.shape[0]
    n_total = n_p + n_u

    # TODO(synk): targets outside {0,1} make (1 - t) match no class (reversed CE
    # silently becomes lse) where PyTorch's CrossEntropyLoss would error.
    z = jnp.concatenate([outputs_p, outputs_u], axis=0)             # (N, C)
    t = jnp.concatenate([targets_p, targets_u]).astype(jnp.int32)   # (N,)

    lanes = _round_up(n_total, _LANES)
    zt = jnp.pad(z, ((0, lanes - n_total), (0, 0))).T               # (C, lanes)
    tt = jnp.pad(t, (0, lanes - n_total)).reshape(1, lanes)

    col_bytes = c * z.dtype.itemsize + 4
    tl = _pick_block_lanes(lanes, col_bytes, block_hint)
    grid = pl.cdiv(lanes, tl)
    kernel = functools.partial(_general_ce_kernel,
                               n_p=n_p, n_total=n_total, block_lanes=tl)
    in_specs = [pl.BlockSpec((c, tl), lambda i: (0, i)),
                pl.BlockSpec((1, tl), lambda i: (0, i))]
    return _launch(kernel, grid, in_specs, (zt, tt))


# ----------------------------------------------------------------------------
# Public entry point
# ----------------------------------------------------------------------------

@functools.partial(jax.jit, static_argnames=("p_prior", "loss_type", "block_rows"))
def pu_loss(outputs_p_w, outputs_u_w, targets_p, targets_u,
            p_prior=0.5, loss_type="uPU", block_rows=None):
    """Pallas implementation of PULoss.forward. Returns a scalar float32."""
    if loss_type not in ("uPU", "nnPU"):
        raise ValueError("Error with loss!")
    n_p, c = outputs_p_w.shape
    n_u, cu = outputs_u_w.shape
    assert c == cu

    sums = _binary_sums if c == 2 else _general_sums
    s_p, s_p_rev, s_u = sums(outputs_p_w, outputs_u_w, targets_p, targets_u,
                             block_rows)

    ce_p = s_p / n_p
    ce_p_rev = s_p_rev / n_p
    ce_u = s_u / n_u

    loss_pos_pos = p_prior * ce_p
    rest = ce_u - p_prior * ce_p_rev          # loss_unlabel_neg + loss_pos_neg
    if loss_type == "uPU":
        return loss_pos_pos + rest
    return loss_pos_pos + jnp.maximum(jnp.float32(0.0), rest)


def _reference(outputs_p_w, outputs_u_w, targets_p, targets_u,
               p_prior=0.5, loss_type="uPU"):
    """Pure-JAX reference mirroring nn.CrossEntropyLoss (mean reduction)."""
    def ce(logits, tgt):
        logz = jax.nn.log_softmax(logits.astype(jnp.float32), axis=-1)
        return -jnp.mean(jnp.take_along_axis(
            logz, tgt[:, None].astype(jnp.int32), axis=-1))
    l_pp = p_prior * ce(outputs_p_w, targets_p)
    l_un = ce(outputs_u_w, targets_u)
    l_pn = -p_prior * ce(outputs_p_w, 1 - targets_p)
    if loss_type == "uPU":
        return l_pp + l_un + l_pn
    return l_pp + jnp.maximum(0.0, l_un + l_pn)


if __name__ == "__main__":
    key = jax.random.PRNGKey(0)

    def run_case(n_p, n_u, c, dtype, block_rows, p_prior, tol):
        k = jax.random.fold_in(key, n_p * 7 + n_u * 13 + c)
        k1, k2, k3, k4 = jax.random.split(k, 4)
        op = jax.random.normal(k1, (n_p, c), dtype=jnp.float32).astype(dtype)
        ou = jax.random.normal(k2, (n_u, c), dtype=jnp.float32).astype(dtype)
        tp = jax.random.randint(k3, (n_p,), 0, 2, dtype=jnp.int32)
        tu = jax.random.randint(k4, (n_u,), 0, 2, dtype=jnp.int32)
        for lt in ("uPU", "nnPU"):
            got = jax.block_until_ready(
                pu_loss(op, ou, tp, tu, p_prior=p_prior, loss_type=lt,
                        block_rows=block_rows))
            want = _reference(op, ou, tp, tu, p_prior=p_prior, loss_type=lt)
            assert jnp.allclose(got, want, atol=tol, rtol=tol), (lt, got, want)

    # Binary (C == 2) fused-margin path: multi-tile grid, mixed pos/unl boundary tile.
    run_case(1300, 777, 2, jnp.float32, 8, 0.4, 1e-5)
    # Binary path, auto tile size, bf16 inputs (margin precomputed in f32).
    run_case(300, 452, 2, jnp.bfloat16, None, 0.5, 1e-3)
    # General C > 2 lane-dense path (targets in {0,1}).
    run_case(52, 36, 4, jnp.float32, 16, 0.5, 1e-5)

    print("KERNEL_OK")
</pallas_src>

<mosaic_0001>
module attributes {stable_mosaic.version = 11 : i64} {
  func.func @_binary_margin_kernel(%arg0: i32, %arg1: memref<8x128xf32, #tpu.memory_space<vmem>>, %arg2: memref<1x8x128xf32, #tpu.memory_space<vmem>>) attributes {dimension_semantics = [#tpu.dimension_semantics<parallel>], iteration_bounds = array<i64: 3>, scalar_prefetch = 0 : i64, scratch_operands = 0 : i64, tpu.core_type = #tpu.core_type<tc>, window_params = [{transform_indices = @transform_0, window_bounds = array<i64: 8, 128>}, {transform_indices = @transform_1, window_bounds = array<i64: 1, 8, 128>}]} {
    %c0 = arith.constant 0 : index
    %c0_0 = arith.constant 0 : index
    %0 = vector.load %arg1[%c0, %c0_0] : memref<8x128xf32, #tpu.memory_space<vmem>>, vector<8x128xf32>
    %cst = arith.constant 0.000000e+00 : f32
    %1 = vector.broadcast %cst : f32 to vector<8x128xf32>
    %2 = arith.maximumf %0, %1 : vector<8x128xf32>
    %3 = math.absf %0 : vector<8x128xf32>
    %cst_1 = arith.constant 0.000000e+00 : f32
    %4 = vector.broadcast %cst_1 : f32 to vector<8x128xf32>
    %5 = arith.subf %4, %3 : vector<8x128xf32>
    %6 = math.exp %5 : vector<8x128xf32>
    %cst_2 = arith.constant 1.000000e+00 : f32
    %7 = vector.broadcast %cst_2 : f32 to vector<8x128xf32>
    %8 = arith.addf %7, %6 : vector<8x128xf32>
    %9 = math.log %8 : vector<8x128xf32>
    %10 = arith.addf %2, %9 : vector<8x128xf32>
    %11 = tpu.iota {dimensions = array<i32: 0>} : vector<8x128xi32>
    %12 = tpu.iota {dimensions = array<i32: 1>} : vector<8x128xi32>
    %c8_i32 = arith.constant 8 : i32
    %13 = arith.muli %arg0, %c8_i32 : i32
    %14 = vector.broadcast %13 : i32 to vector<8x128xi32>
    %15 = arith.addi %14, %11 : vector<8x128xi32>
    %c128_i32 = arith.constant 128 : i32
    %16 = vector.broadcast %c128_i32 : i32 to vector<8x128xi32>
    %17 = arith.muli %15, %16 : vector<8x128xi32>
    %18 = arith.addi %17, %12 : vector<8x128xi32>
    %c1300_i32 = arith.constant 1300 : i32
    %19 = vector.broadcast %c1300_i32 : i32 to vector<8x128xi32>
    %20 = arith.cmpi slt, %18, %19 : vector<8x128xi32>
    %c2077_i32 = arith.constant 2077 : i32
    %21 = vector.broadcast %c2077_i32 : i32 to vector<8x128xi32>
    %22 = arith.cmpi slt, %18, %21 : vector<8x128xi32>
    %cst_3 = arith.constant 0.000000e+00 : f32
    %23 = vector.broadcast %cst_3 : f32 to vector<8x128xf32>
    %24 = arith.select %20, %10, %23 : vector<8x128xi1>, vector<8x128xf32>
    %25 = vector.shape_cast %24 : vector<8x128xf32> to vector<1x8x128xf32>
    %cst_4 = arith.constant dense<0.000000e+00> : vector<1xf32>
    %26 = vector.multi_reduction <add>, %25, %cst_4 [1, 2] : vector<1x8x128xf32> to vector<1xf32>
    %27 = vector.shape_cast %26 : vector<1xf32> to vector<1x1x1xf32>
    %28 = vector.extract %27[0, 0, 0] : f32 from vector<1x1x1xf32>
    %cst_5 = arith.constant 0.000000e+00 : f32
    %29 = vector.broadcast %cst_5 : f32 to vector<8x128xf32>
    %30 = arith.select %20, %0, %29 : vector<8x128xi1>, vector<8x128xf32>
    %31 = vector.shape_cast %30 : vector<8x128xf32> to vector<1x8x128xf32>
    %cst_6 = arith.constant dense<0.000000e+00> : vector<1xf32>
    %32 = vector.multi_reduction <add>, %31, %cst_6 [1, 2] : vector<1x8x128xf32> to vector<1xf32>
    %33 = vector.shape_cast %32 : vector<1xf32> to vector<1x1x1xf32>
    %34 = vector.extract %33[0, 0, 0] : f32 from vector<1x1x1xf32>
    %cst_7 = arith.constant 0.000000e+00 : f32
    %35 = vector.broadcast %cst_7 : f32 to vector<8x128xf32>
    %36 = arith.select %22, %10, %35 : vector<8x128xi1>, vector<8x128xf32>
    %37 = vector.shape_cast %36 : vector<8x128xf32> to vector<1x8x128xf32>
    %cst_8 = arith.constant dense<0.000000e+00> : vector<1xf32>
    %38 = vector.multi_reduction <add>, %37, %cst_8 [1, 2] : vector<1x8x128xf32> to vector<1xf32>
    %39 = vector.shape_cast %38 : vector<1xf32> to vector<1x1x1xf32>
    %40 = vector.extract %39[0, 0, 0] : f32 from vector<1x1x1xf32>
    %41 = arith.subf %40, %28 : f32
    %42 = tpu.iota {dimensions = array<i32: 0>} : vector<8x128xi32>
    %c0_i32 = arith.constant 0 : i32
    %43 = vector.broadcast %c0_i32 : i32 to vector<8x128xi32>
    %44 = arith.cmpi eq, %42, %43 : vector<8x128xi32>
    %c1_i32 = arith.constant 1 : i32
    %45 = vector.broadcast %c1_i32 : i32 to vector<8x128xi32>
    %46 = arith.cmpi eq, %42, %45 : vector<8x128xi32>
    %c2_i32 = arith.constant 2 : i32
    %47 = vector.broadcast %c2_i32 : i32 to vector<8x128xi32>
    %48 = arith.cmpi eq, %42, %47 : vector<8x128xi32>
    %cst_9 = arith.constant 0.000000e+00 : f32
    %49 = vector.broadcast %41 : f32 to vector<8x128xf32>
    %50 = vector.broadcast %cst_9 : f32 to vector<8x128xf32>
    %51 = arith.select %48, %49, %50 : vector<8x128xi1>, vector<8x128xf32>
    %52 = vector.broadcast %34 : f32 to vector<8x128xf32>
    %53 = arith.select %46, %52, %51 : vector<8x128xi1>, vector<8x128xf32>
    %54 = vector.broadcast %28 : f32 to vector<8x128xf32>
    %55 = arith.select %44, %54, %53 : vector<8x128xi1>, vector<8x128xf32>
    %56 = vector.shape_cast %55 : vector<8x128xf32> to vector<1x8x128xf32>
    %c0_10 = arith.constant 0 : index
    %c0_11 = arith.constant 0 : index
    %c0_12 = arith.constant 0 : index
    %57 = vector.load %arg2[%c0_10, %c0_11, %c0_12] : memref<1x8x128xf32, #tpu.memory_space<vmem>>, vector<1x8x128xf32>
    tpu.vector_store %arg2[%c0_10, %c0_11, %c0_12], %56 {strides = array<i32>} : memref<1x8x128xf32, #tpu.memory_space<vmem>>, vector<1x8x128xf32>,
    return
  }
  func.func @transform_0(%arg0: i32) -> (i32, i32) {
    %c0_i32 = arith.constant 0 : i32
    %c0_i32_0 = arith.constant 0 : i32
    return %arg0, %c0_i32 : i32, i32
  }
  func.func @transform_1(%arg0: i32) -> (i32, i32, i32) {
    %c0_i32 = arith.constant 0 : i32
    %c0_i32_0 = arith.constant 0 : i32
    %c0_i32_1 = arith.constant 0 : i32
    return %arg0, %c0_i32, %c0_i32_0 : i32, i32, i32
  }
}

</mosaic_0001>

<bundles_post_ra>
// kernel: pu_loss.1
= control target key start
LH: loop header
LB: loop body
LE: loop exit
PB: predicated region body
PF: predicated region fallthrough
CT: control target
= control target key end

     0   :  { %s273_s6 = smov 0   ;;  %s297_s0 = inlined_call_operand.vmem [shape: f32[24,128], index: 0, kind: input, shape index: {}]   ;;  %s298_s1 = inlined_call_operand.vmem [shape: f32[3,8,128], index: 1, kind: output, shape index: {}]  }
   0x1 LB: > { %s227_s7 = sadd.s32 4294967295, %s261_s6   ;;  %p231_p0 = scmp.ge.s32.totalorder %s261_s6, 1  ;;  %s261_s6 = sphi %s273_s6, %s11_s6  }
   0x2   : > { %p86_p1 = scmp.lt.s32.totalorder %s261_s6, 4 }
   0x4   : > { %p87_p2 = pnand %p231_p0, %p86_p1 }
   0x5   : > { %p104_p3 = scmp.lt.s32.totalorder (!%p87_p2), %s227_s7, 2  ;;  %v122_v4 = vlaneseq (!%p87_p2)  ;;  %s234_s13 = sshll.u32 (!%p87_p2), %s227_s7, 3 }
   0x6   : > { %90 = sbr.rel (%p87_p2) target bundleno = 269 (0x10d), region = 24  ;;  %v127_v7 = vstv (!%p87_p2), %s234_s13 }
   0x7   : > { %v123_v5 = vshrl.u32 (!%p87_p2), %v122_v4, 7  ;;  %v125_v10 = vand.u32 (!%p87_p2), 127, %v122_v4 }
   0x9   : > { %v128_v9 = vadd.s32 (!%p87_p2), %v127_v7, %v123_v5  ;;  %vm166_vm2 = vcmp.eq.s32.totalorder (!%p87_p2), %v123_v5, 2  ;;  %vm165_vm3 = vcmp.eq.s32.totalorder (!%p87_p2), %v123_v5, 1  ;;  %vm164_vm4 = vcmp.eq.s32.totalorder (!%p87_p2), %v123_v5, 0 }
   0xb   : > { %v129_v11 = vmul.u32 (!%p87_p2), 128, %v128_v9 }
   0xd   : > { %s281_s8 = scalar_select %p104_p3, %s227_s7, 2  ;;  %v130_v12 = vadd.s32 %v129_v11, %v125_v10 }
   0xf   : > { %s232_s9 = sshll.u32 %s281_s8, 3  ;;  %vm132_vm0 = vcmp.lt.s32.totalorder %v130_v12, 2077  ;;  %vm131_vm1 = vcmp.lt.s32.totalorder %v130_v12, 1300 }
  0x10   : > { %s107_s12 = scalar_lea.vmem %s297_s0, %s232_s9  ;;  %s111_s20 = scalar_lea.vmem %s298_s1, %s232_s9 }
  0x11   : > { %v112_v0 = vld [vmem:[%s107_s12] sm:$0xff] }
  0x12   : > { %v114_v1 = vand.u32 2147483647, %v112_v0  ;;  %v113_v13 = vmax.f32 %v112_v0, 0.0  ;;  %v143_v19 = vsel %vm131_vm1, %v112_v0, 0.0 }
  0x14   : > { %v115_v2 = vsub.f32 0.0, %v114_v1 }
  0x16   : > { %v116_v3 = vmul.f32 1.442695, %v115_v2 }
  0x18   : > { %251 = vpow2.f32 %v116_v3 }
  0x22   : > { %v252_v6 = vpop.eup %251 }
  0x23   : > { %v118_v8 = vadd.f32 1.0, %v252_v6 }
  0x25   : > { %253 = vlog2.f32 %v118_v8 }
  0x2f   : > { %v254_v14 = vpop.eup %253 }
  0x30   : > { %v120_v15 = vmul.f32 0.6931472, %v254_v14 }
  0x32   : > { %v121_v16 = vadd.f32 %v120_v15, %v113_v13 }
  0x34   : > { %v153_v17 = vsel %vm132_vm0, %v121_v16, 0.0  ;;  %v133_v18 = vsel %vm131_vm1, %v121_v16, 0.0 }
  0x35   : > { %154 = vadd.xlane.f32.xlu1 %v153_v17  ;;  %134 = vadd.xlane.f32.xlu0 %v133_v18 }
  0x39   : > { %144 = vadd.xlane.f32.xlu0 %v143_v19 }
  0xc2   : > { %v155_v20 = vpop.xlane.xlu1 %154  ;;  %v135_v21 = vpop.xlane.xlu0 %134 }
  0xc3   : > { %v156_v22 = vrot.slane %v155_v20, 4  ;;  %v136_v23 = vrot.slane %v135_v21, 4 }
  0xc5   : > { %v157_v24 = vadd.f32 %v156_v22, %v155_v20  ;;  %v137_v25 = vadd.f32 %v136_v23, %v135_v21 }
  0xc6   : > { %v145_v26 = vpop.xlane.xlu0 %144 }
  0xc7   : > { %v158_v27 = vrot.slane %v157_v24, 2  ;;  %v138_v28 = vrot.slane %v137_v25, 2  ;;  %v146_v29 = vrot.slane %v145_v26, 4 }
  0xc9   : > { %v147_v30 = vadd.f32 %v146_v29, %v145_v26  ;;  %v139_v31 = vadd.f32 %v138_v28, %v137_v25  ;;  %v159_v32 = vadd.f32 %v158_v27, %v157_v24 }
  0xcb   : > { %v148_v33 = vrot.slane %v147_v30, 2  ;;  %v140_v34 = vrot.slane %v139_v31, 1  ;;  %v160_v37 = vrot.slane %v159_v32, 1 }
  0xcd   : > { %v149_v35 = vadd.f32 %v148_v33, %v147_v30  ;;  %v141_v36 = vadd.f32 %v140_v34, %v139_v31  ;;  %v161_v40 = vadd.f32 %v160_v37, %v159_v32 }
  0xcf   : > { %237 = vpush %v141_v36  ;;  %v150_v38 = vrot.slane %v149_v35, 1 }
  0xd1   : > { %v151_v39 = vadd.f32 %v150_v38, %v149_v35 }
  0xd3   : > { %239 = vpush %v151_v39 }
  0xd4   : > { %241 = vpush %v161_v40 }
 0x100   : > { %s238_s14 = spop %237 }
 0x101   : > { %v171_v44 = vstv %s238_s14 }
 0x104   : > { %s240_s15 = spop %239 }
 0x105   : > { %s242_s16 = spop %241  ;;  %v169_v42 = vstv %s240_s15 }
 0x106   : > { %s163_s17 = ssub.f32 %s242_s16, %s238_s14 }
 0x108   : > { %v167_v41 = vstv %s163_s17 }
 0x109   : > { %v168_v43 = vsel %vm166_vm2, %v167_v41, 0.0 }
 0x10a   : > { %v170_v45 = vsel %vm165_vm3, %v169_v42, %v168_v43 }
 0x10b   : > { %v172_v46 = vsel %vm164_vm4, %v171_v44, %v170_v45 }
 0x10c   : > { %173 = vst [vmem:[%s111_s20] sm:$0xff] %v172_v46 }
 0x10d PF: > { %s11_s6 = sadd.s32 1, %s261_s6  }
 0x10e   : > { %p8_p4 = scmp.ge.s32.totalorder %s11_s6, 5  }
 0x110   :  { %10 = sbr.rel (!%p8_p4) target bundleno = 1 (0x1), region = 54 }

</bundles_post_ra>
